<compile_context>
chip_gen: v6e
topology: v6e:2x2x1
jax: 0.10.0
libtpu: 0.0.40
codegen_flags: <defaults>
</compile_context>

<pallas_src>
import functools

import jax
import jax.numpy as jnp
from jax import lax
from jax.experimental import pallas as pl
from jax.experimental.pallas import tpu as pltpu

# Same sentinel as the torch code.  Mining happens on squared distances, so this assumes
# max ||x_i - x_j||^2 << 1e7 (true for typical unit-scale / normalized features).
_BIG = 9999999.0


def _round_up(x, m):
    return (x + m - 1) // m * m


def _soft_triplet_kernel(q1_ref, q2_ref, k1_ref, k2_ref, ksq1_ref, ksq2_ref,
                         labq_ref, labk_ref, w_ref, out_ref,
                         *, n_valid, use_bf16):
    # q*: (TM, D) query rows, k*: (NP, D) all keys, ksq*: (1, NP) key squared norms,
    # labq: (TM, 1) i32, labk: (1, NP) i32, w: (TM, 1) f32, out: (TM, 1) f32.
    q1 = q1_ref[...]
    k1 = k1_ref[...]
    labq = labq_ref[...]
    labk = labk_ref[...]

    tile_m = q1.shape[0]
    n_pad = k1.shape[0]

    same = labq == labk                                           # (TM, NP) bool
    if n_pad != n_valid:
        # Padded key columns must not participate in mining (trace-time branch).
        col = lax.broadcasted_iota(jnp.int32, (tile_m, n_pad), 1)
        valid = col < n_valid
        pos_mask = jnp.logical_and(same, valid)
        neg_mask = jnp.logical_and(jnp.logical_not(same), valid)
    else:
        pos_mask = same
        neg_mask = jnp.logical_not(same)

    def sq_dist(q, qsq_col, k, ksq_row):
        if use_bf16:
            g = lax.dot_general(q.astype(jnp.bfloat16), k.astype(jnp.bfloat16),
                                dimension_numbers=(((1,), (1,)), ((), ())),
                                preferred_element_type=jnp.float32)
        else:
            g = lax.dot_general(q, k,
                                dimension_numbers=(((1,), (1,)), ((), ())),
                                preferred_element_type=jnp.float32)
        return qsq_col + ksq_row - 2.0 * g                        # (TM, NP) squared dists

    # ---- student squared distances + batch-hard mining (sqrt deferred) ----
    q1sq = jnp.sum(q1 * q1, axis=1, keepdims=True)                # (TM, 1)
    d2_s = sq_dist(q1, q1sq, k1, ksq1_ref[...])                   # (TM, NP)

    hard_p2 = jnp.max(jnp.where(pos_mask, d2_s, -_BIG), axis=1, keepdims=True)
    hard_n2 = jnp.min(jnp.where(neg_mask, d2_s, _BIG), axis=1, keepdims=True)
    # Exact equality: the row max/min is a bitwise copy of an element of d2_s, so at
    # least one masked column matches.
    eq_p = jnp.logical_and(pos_mask, d2_s == hard_p2)
    eq_n = jnp.logical_and(neg_mask, d2_s == hard_n2)
    # d2_s is dead beyond this point; the teacher matrix reuses its VMEM footprint.

    # ---- teacher squared distances, gathered at the mined positions ----
    q2 = q2_ref[...]
    k2 = k2_ref[...]
    q2sq = jnp.sum(q2 * q2, axis=1, keepdims=True)
    d2_t = sq_dist(q2, q2sq, k2, ksq2_ref[...])

    ap_ref2 = jnp.max(jnp.where(eq_p, d2_t, -_BIG), axis=1, keepdims=True)
    an_ref2 = jnp.max(jnp.where(eq_n, d2_t, -_BIG), axis=1, keepdims=True)

    # clamp(min=1e-12) + sqrt only on the 4 selected (TM, 1) vectors (matches
    # euclidean_dist's clamp(1e-12).sqrt(); clamp/sqrt commute with max/min).
    eps = 1e-12
    d_ap = jnp.sqrt(jnp.maximum(hard_p2, eps))
    d_an = jnp.sqrt(jnp.maximum(hard_n2, eps))
    d_ap_r = jnp.sqrt(jnp.maximum(ap_ref2, eps))
    d_an_r = jnp.sqrt(jnp.maximum(an_ref2, eps))

    # log_softmax over the (ap, an) pair (student)
    m1 = jnp.maximum(d_ap, d_an)
    lse = m1 + jnp.log(jnp.exp(d_ap - m1) + jnp.exp(d_an - m1))
    log_p = d_ap - lse
    log_n = d_an - lse

    # softmax over the (ap, an) pair (teacher target, detached)
    m2 = jnp.maximum(d_ap_r, d_an_r)
    ea = jnp.exp(d_ap_r - m2)
    eb = jnp.exp(d_an_r - m2)
    inv_denom = 1.0 / (ea + eb)
    ref_p = ea * inv_denom
    ref_n = eb * inv_denom

    out_ref[...] = -(ref_p * log_p + ref_n * log_n) * w_ref[...]


def soft_triplet_loss_weight(emb1, emb2, label, weights, *, normalize_feature=False,
                             tile_m=128, use_bf16_matmul=False):
    # TODO(synk): margin != None path (fixed-margin weighting of log_softmax) not implemented.
    # TODO(synk): mid_hard=True (2nd-hardest positive) path not implemented.
    emb1 = jnp.asarray(emb1, jnp.float32)
    emb2 = jnp.asarray(emb2, jnp.float32)
    if normalize_feature:
        emb1 = emb1 / jnp.maximum(jnp.linalg.norm(emb1, axis=1, keepdims=True), 1e-12)
        emb2 = emb2 / jnp.maximum(jnp.linalg.norm(emb2, axis=1, keepdims=True), 1e-12)

    N, D = emb1.shape
    label = jnp.asarray(label, jnp.int32).reshape(N)
    weights = jnp.asarray(weights, jnp.float32).reshape(N)

    # Row-block size: multiple of 8 (sublanes); whole batch if it is small.
    tile_m = max(8, _round_up(tile_m, 8))
    tm = _round_up(N, 8) if N <= tile_m else tile_m
    n_pad = _round_up(N, tm)
    pad = n_pad - N

    if pad:
        emb1_p = jnp.pad(emb1, ((0, pad), (0, 0)))
        emb2_p = jnp.pad(emb2, ((0, pad), (0, 0)))
        lab_p = jnp.pad(label, (0, pad), constant_values=-1)
        w_p = jnp.pad(weights, (0, pad))             # padded rows contribute 0 to the sum
    else:
        emb1_p, emb2_p, lab_p, w_p = emb1, emb2, label, weights

    # Per-key squared norms (computed once in XLA; avoids an in-kernel (NP,1)->(1,NP)
    # transpose and per-grid-step recompute).
    ksq1 = jnp.sum(emb1_p * emb1_p, axis=1)[None, :]              # (1, n_pad)
    ksq2 = jnp.sum(emb2_p * emb2_p, axis=1)[None, :]              # (1, n_pad)
    lab_col = lab_p[:, None]                                      # (n_pad, 1)
    lab_row = lab_p[None, :]                                      # (1, n_pad)
    w_col = w_p[:, None]                                          # (n_pad, 1)

    grid_m = n_pad // tm
    kernel = functools.partial(_soft_triplet_kernel, n_valid=N, use_bf16=use_bf16_matmul)

    per_row = pl.pallas_call(
        kernel,
        grid=(grid_m,),
        in_specs=[
            pl.BlockSpec((tm, D), lambda i: (i, 0)),       # emb1 query rows   (student)
            pl.BlockSpec((tm, D), lambda i: (i, 0)),       # emb2 query rows   (teacher)
            pl.BlockSpec((n_pad, D), lambda i: (0, 0)),    # emb1 all keys     (student)
            pl.BlockSpec((n_pad, D), lambda i: (0, 0)),    # emb2 all keys     (teacher)
            pl.BlockSpec((1, n_pad), lambda i: (0, 0)),    # ||emb1_j||^2
            pl.BlockSpec((1, n_pad), lambda i: (0, 0)),    # ||emb2_j||^2
            pl.BlockSpec((tm, 1), lambda i: (i, 0)),       # labels of query rows
            pl.BlockSpec((1, n_pad), lambda i: (0, 0)),    # labels of all keys
            pl.BlockSpec((tm, 1), lambda i: (i, 0)),       # weights of query rows
        ],
        out_specs=pl.BlockSpec((tm, 1), lambda i: (i, 0)),
        out_shape=jax.ShapeDtypeStruct((n_pad, 1), jnp.float32),
        compiler_params=pltpu.CompilerParams(dimension_semantics=("parallel",)),
    )(emb1_p, emb2_p, emb1_p, emb2_p, ksq1, ksq2, lab_col, lab_row, w_col)

    return jnp.sum(per_row)


# ------------------------- pure-JAX reference (mirrors the torch code) ----------------
def _ref_loss(emb1, emb2, label, weights):
    def edist(x):
        sq = jnp.sum(x * x, axis=1, keepdims=True)
        d2 = sq + sq.T - 2.0 * x @ x.T
        return jnp.sqrt(jnp.clip(d2, 1e-12, None))

    N = emb1.shape[0]
    mat_dist = edist(emb1)
    mat_sim = (label[:, None] == label[None, :]).astype(jnp.float32)

    vals_p = mat_dist + (-_BIG) * (1.0 - mat_sim)
    hard_p = jnp.max(vals_p, axis=1)
    ap_idx = jnp.argmax(vals_p, axis=1)
    vals_n = mat_dist + _BIG * mat_sim
    hard_n = jnp.min(vals_n, axis=1)
    an_idx = jnp.argmin(vals_n, axis=1)

    triple = jax.nn.log_softmax(jnp.stack([hard_p, hard_n], axis=1), axis=1)

    mat_dist_ref = edist(emb2)
    dist_ap_ref = mat_dist_ref[jnp.arange(N), ap_idx]
    dist_an_ref = mat_dist_ref[jnp.arange(N), an_idx]
    triple_ref = jax.nn.softmax(jnp.stack([dist_ap_ref, dist_an_ref], axis=1), axis=1)

    return jnp.sum(-jnp.sum(triple_ref * triple, axis=1) * weights)


if __name__ == "__main__":
    key = jax.random.PRNGKey(0)

    # Case 1: aligned batch (N multiple of 8), single row block.
    N, D = 8, 32
    k1, k2, k3 = jax.random.split(key, 3)
    emb1 = jax.random.normal(k1, (N, D), jnp.float32)
    emb2 = emb1 + 0.1 * jax.random.normal(k2, (N, D), jnp.float32)
    label = jnp.array([0, 0, 1, 1, 2, 2, 3, 3], jnp.int32)
    weights = jax.random.uniform(k3, (N,), jnp.float32)

    loss = jax.block_until_ready(soft_triplet_loss_weight(emb1, emb2, label, weights))
    ref = _ref_loss(emb1, emb2, label, weights)
    assert jnp.allclose(loss, ref, rtol=1e-4, atol=1e-5), (loss, ref)

    # Case 2: unaligned batch (N=6 -> padded to 8) exercising the padded-column masking.
    N2 = 6
    k4, k5, k6 = jax.random.split(jax.random.PRNGKey(0), 3)
    e1 = jax.random.normal(k4, (N2, D), jnp.float32)
    e2 = e1 + 0.1 * jax.random.normal(k5, (N2, D), jnp.float32)
    lab2 = jnp.array([0, 0, 1, 1, 2, 2], jnp.int32)
    w2 = jax.random.uniform(k6, (N2,), jnp.float32)

    loss2 = jax.block_until_ready(soft_triplet_loss_weight(e1, e2, lab2, w2))
    ref2 = _ref_loss(e1, e2, lab2, w2)
    assert jnp.allclose(loss2, ref2, rtol=1e-4, atol=1e-5), (loss2, ref2)

    print("KERNEL_OK")
</pallas_src>

<mosaic_0001>
module attributes {stable_mosaic.version = 11 : i64} {
  func.func @_soft_triplet_kernel(%arg0: i32, %arg1: memref<8x32xf32, #tpu.memory_space<vmem>>, %arg2: memref<8x32xf32, #tpu.memory_space<vmem>>, %arg3: memref<8x32xf32, #tpu.memory_space<vmem>>, %arg4: memref<8x32xf32, #tpu.memory_space<vmem>>, %arg5: memref<1x8xf32, #tpu.memory_space<vmem>>, %arg6: memref<1x8xf32, #tpu.memory_space<vmem>>, %arg7: memref<8x1xi32, #tpu.memory_space<vmem>>, %arg8: memref<1x8xi32, #tpu.memory_space<vmem>>, %arg9: memref<8x1xf32, #tpu.memory_space<vmem>>, %arg10: memref<8x1xf32, #tpu.memory_space<vmem>>) attributes {dimension_semantics = [#tpu.dimension_semantics<parallel>], iteration_bounds = array<i64: 1>, scalar_prefetch = 0 : i64, scratch_operands = 0 : i64, tpu.core_type = #tpu.core_type<tc>, window_params = [{transform_indices = @transform_0, window_bounds = array<i64: 8, 32>}, {transform_indices = @transform_1, window_bounds = array<i64: 8, 32>}, {pipeline_mode = #tpu.pipeline_mode<synchronous>, transform_indices = @transform_2, window_bounds = array<i64: 8, 32>}, {pipeline_mode = #tpu.pipeline_mode<synchronous>, transform_indices = @transform_3, window_bounds = array<i64: 8, 32>}, {pipeline_mode = #tpu.pipeline_mode<synchronous>, transform_indices = @transform_4, window_bounds = array<i64: 1, 8>}, {pipeline_mode = #tpu.pipeline_mode<synchronous>, transform_indices = @transform_5, window_bounds = array<i64: 1, 8>}, {transform_indices = @transform_6, window_bounds = array<i64: 8, 1>}, {pipeline_mode = #tpu.pipeline_mode<synchronous>, transform_indices = @transform_7, window_bounds = array<i64: 1, 8>}, {transform_indices = @transform_8, window_bounds = array<i64: 8, 1>}, {transform_indices = @transform_9, window_bounds = array<i64: 8, 1>}]} {
    %c0 = arith.constant 0 : index
    %c0_0 = arith.constant 0 : index
    %0 = vector.load %arg1[%c0, %c0_0] : memref<8x32xf32, #tpu.memory_space<vmem>>, vector<8x32xf32>
    %c0_1 = arith.constant 0 : index
    %c0_2 = arith.constant 0 : index
    %1 = vector.load %arg3[%c0_1, %c0_2] : memref<8x32xf32, #tpu.memory_space<vmem>>, vector<8x32xf32>
    %c0_3 = arith.constant 0 : index
    %c0_4 = arith.constant 0 : index
    %2 = vector.load %arg7[%c0_3, %c0_4] : memref<8x1xi32, #tpu.memory_space<vmem>>, vector<8x1xi32>
    %c0_5 = arith.constant 0 : index
    %c0_6 = arith.constant 0 : index
    %3 = vector.load %arg8[%c0_5, %c0_6] : memref<1x8xi32, #tpu.memory_space<vmem>>, vector<1x8xi32>
    %4 = vector.broadcast %2 : vector<8x1xi32> to vector<8x8xi32>
    %5 = vector.broadcast %3 : vector<1x8xi32> to vector<8x8xi32>
    %6 = arith.cmpi eq, %4, %5 : vector<8x8xi32>
    %cst = arith.constant dense<true> : vector<8x8xi1>
    %7 = arith.xori %6, %cst : vector<8x8xi1>
    %8 = arith.mulf %0, %0 : vector<8x32xf32>
    %cst_7 = arith.constant dense<0.000000e+00> : vector<8xf32>
    %9 = vector.multi_reduction <add>, %8, %cst_7 [1] : vector<8x32xf32> to vector<8xf32>
    %10 = vector.shape_cast %9 : vector<8xf32> to vector<8x1xf32>
    %c0_8 = arith.constant 0 : index
    %c0_9 = arith.constant 0 : index
    %11 = vector.load %arg5[%c0_8, %c0_9] : memref<1x8xf32, #tpu.memory_space<vmem>>, vector<1x8xf32>
    %cst_10 = arith.constant dense<0.000000e+00> : vector<8x8xf32>
    %12 = tpu.matmul %0, %1, %cst_10 {dimension_numbers = #tpu.dot_dimension_numbers<[1], [1], [0], [0], [0, 0, 1, 0], [], []>} : vector<8x32xf32>, vector<8x32xf32>, vector<8x8xf32> -> vector<8x8xf32>
    %13 = vector.broadcast %10 : vector<8x1xf32> to vector<8x8xf32>
    %14 = vector.broadcast %11 : vector<1x8xf32> to vector<8x8xf32>
    %15 = arith.addf %13, %14 : vector<8x8xf32>
    %cst_11 = arith.constant 2.000000e+00 : f32
    %16 = vector.broadcast %cst_11 : f32 to vector<8x8xf32>
    %17 = arith.mulf %16, %12 : vector<8x8xf32>
    %18 = arith.subf %15, %17 : vector<8x8xf32>
    %cst_12 = arith.constant 0xCB18967F : f32
    %19 = vector.broadcast %cst_12 : f32 to vector<8x8xf32>
    %20 = arith.select %6, %18, %19 : vector<8x8xi1>, vector<8x8xf32>
    %cst_13 = arith.constant dense<0xFF800000> : vector<8xf32>
    %21 = vector.multi_reduction <maximumf>, %20, %cst_13 [1] : vector<8x8xf32> to vector<8xf32>
    %22 = vector.shape_cast %21 : vector<8xf32> to vector<8x1xf32>
    %cst_14 = arith.constant 0x4B18967F : f32
    %23 = vector.broadcast %cst_14 : f32 to vector<8x8xf32>
    %24 = arith.select %7, %18, %23 : vector<8x8xi1>, vector<8x8xf32>
    %cst_15 = arith.constant dense<0x7F800000> : vector<8xf32>
    %25 = vector.multi_reduction <minimumf>, %24, %cst_15 [1] : vector<8x8xf32> to vector<8xf32>
    %26 = vector.shape_cast %25 : vector<8xf32> to vector<8x1xf32>
    %27 = vector.broadcast %22 : vector<8x1xf32> to vector<8x8xf32>
    %28 = arith.cmpf oeq, %18, %27 : vector<8x8xf32>
    %29 = arith.andi %6, %28 : vector<8x8xi1>
    %30 = vector.broadcast %26 : vector<8x1xf32> to vector<8x8xf32>
    %31 = arith.cmpf oeq, %18, %30 : vector<8x8xf32>
    %32 = arith.andi %7, %31 : vector<8x8xi1>
    %c0_16 = arith.constant 0 : index
    %c0_17 = arith.constant 0 : index
    %33 = vector.load %arg2[%c0_16, %c0_17] : memref<8x32xf32, #tpu.memory_space<vmem>>, vector<8x32xf32>
    %c0_18 = arith.constant 0 : index
    %c0_19 = arith.constant 0 : index
    %34 = vector.load %arg4[%c0_18, %c0_19] : memref<8x32xf32, #tpu.memory_space<vmem>>, vector<8x32xf32>
    %35 = arith.mulf %33, %33 : vector<8x32xf32>
    %cst_20 = arith.constant dense<0.000000e+00> : vector<8xf32>
    %36 = vector.multi_reduction <add>, %35, %cst_20 [1] : vector<8x32xf32> to vector<8xf32>
    %37 = vector.shape_cast %36 : vector<8xf32> to vector<8x1xf32>
    %c0_21 = arith.constant 0 : index
    %c0_22 = arith.constant 0 : index
    %38 = vector.load %arg6[%c0_21, %c0_22] : memref<1x8xf32, #tpu.memory_space<vmem>>, vector<1x8xf32>
    %cst_23 = arith.constant dense<0.000000e+00> : vector<8x8xf32>
    %39 = tpu.matmul %33, %34, %cst_23 {dimension_numbers = #tpu.dot_dimension_numbers<[1], [1], [0], [0], [0, 0, 1, 0], [], []>} : vector<8x32xf32>, vector<8x32xf32>, vector<8x8xf32> -> vector<8x8xf32>
    %40 = vector.broadcast %37 : vector<8x1xf32> to vector<8x8xf32>
    %41 = vector.broadcast %38 : vector<1x8xf32> to vector<8x8xf32>
    %42 = arith.addf %40, %41 : vector<8x8xf32>
    %cst_24 = arith.constant 2.000000e+00 : f32
    %43 = vector.broadcast %cst_24 : f32 to vector<8x8xf32>
    %44 = arith.mulf %43, %39 : vector<8x8xf32>
    %45 = arith.subf %42, %44 : vector<8x8xf32>
    %cst_25 = arith.constant 0xCB18967F : f32
    %46 = vector.broadcast %cst_25 : f32 to vector<8x8xf32>
    %47 = arith.select %29, %45, %46 : vector<8x8xi1>, vector<8x8xf32>
    %cst_26 = arith.constant dense<0xFF800000> : vector<8xf32>
    %48 = vector.multi_reduction <maximumf>, %47, %cst_26 [1] : vector<8x8xf32> to vector<8xf32>
    %49 = vector.shape_cast %48 : vector<8xf32> to vector<8x1xf32>
    %cst_27 = arith.constant 0xCB18967F : f32
    %50 = vector.broadcast %cst_27 : f32 to vector<8x8xf32>
    %51 = arith.select %32, %45, %50 : vector<8x8xi1>, vector<8x8xf32>
    %cst_28 = arith.constant dense<0xFF800000> : vector<8xf32>
    %52 = vector.multi_reduction <maximumf>, %51, %cst_28 [1] : vector<8x8xf32> to vector<8xf32>
    %53 = vector.shape_cast %52 : vector<8xf32> to vector<8x1xf32>
    %cst_29 = arith.constant 9.99999996E-13 : f32
    %54 = vector.broadcast %cst_29 : f32 to vector<8x1xf32>
    %55 = arith.maximumf %22, %54 : vector<8x1xf32>
    %56 = math.sqrt %55 : vector<8x1xf32>
    %cst_30 = arith.constant 9.99999996E-13 : f32
    %57 = vector.broadcast %cst_30 : f32 to vector<8x1xf32>
    %58 = arith.maximumf %26, %57 : vector<8x1xf32>
    %59 = math.sqrt %58 : vector<8x1xf32>
    %cst_31 = arith.constant 9.99999996E-13 : f32
    %60 = vector.broadcast %cst_31 : f32 to vector<8x1xf32>
    %61 = arith.maximumf %49, %60 : vector<8x1xf32>
    %62 = math.sqrt %61 : vector<8x1xf32>
    %cst_32 = arith.constant 9.99999996E-13 : f32
    %63 = vector.broadcast %cst_32 : f32 to vector<8x1xf32>
    %64 = arith.maximumf %53, %63 : vector<8x1xf32>
    %65 = math.sqrt %64 : vector<8x1xf32>
    %66 = arith.maximumf %56, %59 : vector<8x1xf32>
    %67 = arith.subf %56, %66 : vector<8x1xf32>
    %68 = math.exp %67 : vector<8x1xf32>
    %69 = arith.subf %59, %66 : vector<8x1xf32>
    %70 = math.exp %69 : vector<8x1xf32>
    %71 = arith.addf %68, %70 : vector<8x1xf32>
    %72 = math.log %71 : vector<8x1xf32>
    %73 = arith.addf %66, %72 : vector<8x1xf32>
    %74 = arith.subf %56, %73 : vector<8x1xf32>
    %75 = arith.subf %59, %73 : vector<8x1xf32>
    %76 = arith.maximumf %62, %65 : vector<8x1xf32>
    %77 = arith.subf %62, %76 : vector<8x1xf32>
    %78 = math.exp %77 : vector<8x1xf32>
    %79 = arith.subf %65, %76 : vector<8x1xf32>
    %80 = math.exp %79 : vector<8x1xf32>
    %81 = arith.addf %78, %80 : vector<8x1xf32>
    %cst_33 = arith.constant 1.000000e+00 : f32
    %82 = vector.broadcast %cst_33 : f32 to vector<8x1xf32>
    %83 = arith.divf %82, %81 : vector<8x1xf32>
    %84 = arith.mulf %78, %83 : vector<8x1xf32>
    %85 = arith.mulf %80, %83 : vector<8x1xf32>
    %86 = arith.mulf %84, %74 : vector<8x1xf32>
    %87 = arith.mulf %85, %75 : vector<8x1xf32>
    %88 = arith.addf %86, %87 : vector<8x1xf32>
    %cst_34 = arith.constant 0.000000e+00 : f32
    %89 = vector.broadcast %cst_34 : f32 to vector<8x1xf32>
    %90 = arith.subf %89, %88 : vector<8x1xf32>
    %c0_35 = arith.constant 0 : index
    %c0_36 = arith.constant 0 : index
    %91 = vector.load %arg9[%c0_35, %c0_36] : memref<8x1xf32, #tpu.memory_space<vmem>>, vector<8x1xf32>
    %92 = arith.mulf %90, %91 : vector<8x1xf32>
    %c0_37 = arith.constant 0 : index
    %c0_38 = arith.constant 0 : index
    %93 = vector.load %arg10[%c0_37, %c0_38] : memref<8x1xf32, #tpu.memory_space<vmem>>, vector<8x1xf32>
    tpu.vector_store %arg10[%c0_37, %c0_38], %92 {strides = array<i32>} : memref<8x1xf32, #tpu.memory_space<vmem>>, vector<8x1xf32>,
    return
  }
  func.func @transform_0(%arg0: i32) -> (i32, i32) {
    %c0_i32 = arith.constant 0 : i32
    %c0_i32_0 = arith.constant 0 : i32
    return %arg0, %c0_i32 : i32, i32
  }
  func.func @transform_1(%arg0: i32) -> (i32, i32) {
    %c0_i32 = arith.constant 0 : i32
    %c0_i32_0 = arith.constant 0 : i32
    return %arg0, %c0_i32 : i32, i32
  }
  func.func @transform_2(%arg0: i32) -> (i32, i32) {
    %c0_i32 = arith.constant 0 : i32
    %c0_i32_0 = arith.constant 0 : i32
    %c0_i32_1 = arith.constant 0 : i32
    return %c0_i32, %c0_i32_0 : i32, i32
  }
  func.func @transform_3(%arg0: i32) -> (i32, i32) {
    %c0_i32 = arith.constant 0 : i32
    %c0_i32_0 = arith.constant 0 : i32
    %c0_i32_1 = arith.constant 0 : i32
    return %c0_i32, %c0_i32_0 : i32, i32
  }
  func.func @transform_4(%arg0: i32) -> (i32, i32) {
    %c0_i32 = arith.constant 0 : i32
    %c0_i32_0 = arith.constant 0 : i32
    %c0_i32_1 = arith.constant 0 : i32
    return %c0_i32, %c0_i32_0 : i32, i32
  }
  func.func @transform_5(%arg0: i32) -> (i32, i32) {
    %c0_i32 = arith.constant 0 : i32
    %c0_i32_0 = arith.constant 0 : i32
    %c0_i32_1 = arith.constant 0 : i32
    return %c0_i32, %c0_i32_0 : i32, i32
  }
  func.func @transform_6(%arg0: i32) -> (i32, i32) {
    %c0_i32 = arith.constant 0 : i32
    %c0_i32_0 = arith.constant 0 : i32
    return %arg0, %c0_i32 : i32, i32
  }
  func.func @transform_7(%arg0: i32) -> (i32, i32) {
    %c0_i32 = arith.constant 0 : i32
    %c0_i32_0 = arith.constant 0 : i32
    %c0_i32_1 = arith.constant 0 : i32
    return %c0_i32, %c0_i32_0 : i32, i32
  }
  func.func @transform_8(%arg0: i32) -> (i32, i32) {
    %c0_i32 = arith.constant 0 : i32
    %c0_i32_0 = arith.constant 0 : i32
    return %arg0, %c0_i32 : i32, i32
  }
  func.func @transform_9(%arg0: i32) -> (i32, i32) {
    %c0_i32 = arith.constant 0 : i32
    %c0_i32_0 = arith.constant 0 : i32
    return %arg0, %c0_i32 : i32, i32
  }
}

</mosaic_0001>

<bundles_post_ra>
// kernel: tpu_custom_call.1
= control target key start
LH: loop header
LB: loop body
LE: loop exit
PB: predicated region body
PF: predicated region fallthrough
CT: control target
= control target key end

     0   :  { %14 = vsyncpa [#allocation3], 0  ;;  %s537_s0 = inlined_call_operand.vmem [shape: f32[8,32], index: 0, kind: input, shape index: {}]   ;;  %s538_s1 = inlined_call_operand.vmem [shape: f32[8,32], index: 1, kind: input, shape index: {}]   ;;  %s539_s2 = inlined_call_operand.hbm [shape: f32[8,32], index: 2, kind: input, shape index: {}]   ;;  %s540_s3 = inlined_call_operand.hbm [shape: f32[8,32], index: 3, kind: input, shape index: {}]   ;;  %s541_s4 = inlined_call_operand.vmem [shape: f32[1,8], index: 4, kind: input, shape index: {}]   ;;  %s542_s5 = inlined_call_operand.vmem [shape: f32[1,8], index: 5, kind: input, shape index: {}]   ;;  %s543_s6 = inlined_call_operand.vmem [shape: s32[8,1], index: 6, kind: input, shape index: {}]   ;;  %s544_s7 = inlined_call_operand.vmem [shape: s32[1,8], index: 7, kind: input, shape index: {}]   ;;  %s545_s8 = inlined_call_operand.vmem [shape: f32[8,1], index: 8, kind: input, shape index: {}]   ;;  %s546_s9 = inlined_call_operand.vmem [shape: f32[8,1], index: 9, kind: output, shape index: {}]  }
   0x1   :  { %15 = vsyncpa [#allocation5], 0  ;;  %s436_s30 = smov [#allocation2]   ;;  %s437_s11 = smov [#allocation4]  }
   0x2   :  { %s26_s10 = sshll.u32 %s436_s30, 4  ;;  %s36_s12 = sshll.u32 %s437_s11, 4  ;;  %s27_s10 = int_to_ptr.vmem [resolvable:$true] %s26_s10  ;;  %s37_s12 = int_to_ptr.vmem [resolvable:$true] %s36_s12 }
   0x3   :  { %s400_s13 = scalar_lea.vmem %s27_s10, 128  ;;  %p405_p1 = scmp.lt.s32.totalorder %s27_s10, %s27_s10 }
   0x4   :  { %p401_p0 = scmp.ne.s32.totalorder %s27_s10, %s400_s13  ;;  %p406_p2 = scmp.lt.s32.totalorder %s400_s13, %s400_s13 }
   0x6   :  { %p407_p3 = por %p406_p2, %p405_p1 }
   0x8   :  { %p408_p4 = pnand %p407_p3, %p401_p0 }
   0xa   :  { %411 = shalt.err (!%p408_p4)
}
   0xb   :  { %29 = dma.hbm_to_vmem [thread:$0]  %s539_s2, 128, %s27_s10, [#allocation3]  }
   0xc   :  { %s420_s16 = scalar_lea.vmem %s37_s12, 128  ;;  %p425_p6 = scmp.lt.s32.totalorder %s37_s12, %s37_s12 }
   0xd   :  { %p421_p5 = scmp.ne.s32.totalorder %s37_s12, %s420_s16  ;;  %p426_p7 = scmp.lt.s32.totalorder %s420_s16, %s420_s16 }
   0xf   :  { %p427_p8 = por %p426_p7, %p425_p6 }
  0x11   :  { %p428_p9 = pnand %p427_p8, %p421_p5 }
  0x13   :  { %431 = shalt.err (!%p428_p9)
}
  0x14   :  { %39 = dma.hbm_to_vmem [thread:$0]  %s540_s3, 128, %s37_s12, [#allocation5]  }
  0x15   :  { %432 = dma.done.wait [#allocation3], 128  }
  0x16   :  { %433 = vsyncadd [#allocation3], 4294967168 }
  0x17   :  { %434 = dma.done.wait [#allocation5], 128  }
  0x18   :  { %435 = vsyncadd [#allocation5], 4294967168  ;;  %v438_v0 = vmov 0.0   ;;  %vm439_vm0 = vmmov 0   ;;  %v440_v1 = vmov 0   ;;  %vm70_vm1 = vcmask 261120  }
  0x19   :  { %355 = vmatprep.subr.mxu0 %v438_v0  ;;  %357 = vmatprep.mubr.msk.f32.mxu0 %vm439_vm0, %v438_v0  ;;  %v57_v2 = vld [vmem:[#allocation2] sm:$0xff]  ;;  %v174_v5 = vld [vmem:[#allocation4] sm:$0xff]  ;;  %vm161_vm3 = vcmask 64512   ;;  %vm441_vm4 = vmmov 1  }
  0x1a   :  { %371 = vset.pattern.permute.xlu0 %v440_v1  ;;  %360 = vmatprep.subr.mxu1 %v438_v0  ;;  %v56_v3 = vld [vmem:[%s537_s0] sm:$0xff] }
  0x1b   :  { %362 = vmatprep.mubr.msk.f32.mxu1 %vm439_vm0, %v438_v0  ;;  %356 = vmatpush3.xpose.msk.msra.mxu0 %vm70_vm1, %v57_v2  ;;  %v69_v4 = vmul.f32 %v56_v3, %v56_v3  ;;  %v173_v6 = vld [vmem:[%s538_s1] sm:$0xff] }
  0x1c   :  { %361 = vmatpush3.xpose.msk.msra.mxu1 %vm70_vm1, %v174_v5  ;;  %v58_v8 = vld [vmem:[%s543_s6] sm:$0xff]  ;;  %v175_v9 = vmul.f32 %v173_v6, %v173_v6 }
  0x1d   :  { %v71_v7 = vsel %vm70_vm1, %v69_v4, 0.0  ;;  %v347_v12 = vld [vmem:[%s541_s4] ss:$0 sm:$0xff] }
  0x1e   :  { %358 = vmatmul.mubr.msk.f32.vlgmr.msra.gmra.mxu0 %vm70_vm1, %v56_v3  ;;  %72 = vadd.xlane.f32.xlu0 %v71_v7  ;;  %v176_v10 = vsel %vm70_vm1, %v175_v9, 0.0  ;;  %v344_v13 = vld [vmem:[%s544_s7] ss:$0 sm:$0xff] }
  0x1f   :  { %363 = vmatmul.mubr.msk.f32.vlgmr.msra.gmra.mxu1 %vm70_vm1, %v173_v6  ;;  %177 = vadd.xlane.f32.xlu1 %v176_v10  ;;  %v350_v28 = vld [vmem:[%s542_s5] ss:$0 sm:$0xff] }
  0x34   :  { %61 = vperm.xlu0 %371, %v58_v8  }
  0xa7   :  { %v73_v11 = vpop.xlane.xlu0 %72 }
  0xa8   :  { %v157_v16 = vadd.f32 %v347_v12, %v73_v11  ;;  %v178_v27 = vpop.xlane.xlu1 %177 }
  0xa9   :  { %v262_v30 = vadd.f32 %v350_v28, %v178_v27  ;;  %v334_v27 = vld [vmem:[%s545_s8] sm:$0xff] }
  0xaf   :  { %v62_v14 = vpop.permute.xlu0 %61 }
  0xb0   :  { %vm67_vm2 = vcmp.eq.s32.totalorder %v62_v14, %v344_v13 }
  0xb1   :  { %vm514_vm5 = vmxor %vm67_vm2, %vm441_vm4 }
  0xde   :  { %v147_v15 = vpop.f32.mrf.mxu0 }
  0xdf   :  { %v158_v17 = vmul.f32 2.0, %v147_v15  ;;  %v252_v18 = vpop.f32.mrf.mxu1 }
  0xe0   :  { %v359_v19 = vpop.f32.mrf.mxu0  ;;  %v263_v29 = vmul.f32 2.0, %v252_v18 }
  0xe1   :  { %v159_v20 = vsub.f32 %v157_v16, %v158_v17  ;;  %v364_v21 = vpop.f32.mrf.mxu1 }
  0xe2   :  { %v264_v32 = vsub.f32 %v262_v30, %v263_v29 }
  0xe3   :  { %v160_v23 = vsel %vm67_vm2, %v159_v20, -9999999.0  ;;  %v165_v25 = vsel %vm514_vm5, %v159_v20, 9999999.0 }
  0xe4   :  { %v162_v24 = vsel %vm161_vm3, %v160_v23, -inf  ;;  %v166_v26 = vsel %vm161_vm3, %v165_v25, inf }
  0xe5   :  { %163 = vmax.xlane.f32.xlu1 %v162_v24 }
  0xe9   :  { %167 = vmin.xlane.f32.xlu1 %v166_v26 }
 0x16e   :  { %v164_v31 = vpop.xlane.xlu1 %163 }
 0x16f   :  { %vm169_vm6 = vcmp.eq.f32.partialorder %v159_v20, %v164_v31  ;;  %v273_v39 = vmax.f32 %v164_v31, 1e-12 }
 0x170   :  { %vm170_vm7 = vmand %vm67_vm2, %vm169_vm6  ;;  %vm336_vm2 = vcmask 7168  }
 0x171   :  { %v265_v34 = vsel %vm170_vm7, %v264_v32, -9999999.0  ;;  %vm276_vm11 = vcmp.eq.f32.partialorder %v273_v39, inf  ;;  %v279_v49 = vand.u32 2147483648, %v273_v39  ;;  %vm278_vm13 = vcmp.eq.f32.partialorder %v273_v39, 0.0 }
 0x172   :  { %v168_v33 = vpop.xlane.xlu1 %167  ;;  %v266_v35 = vsel %vm161_vm3, %v265_v34, -inf }
 0x173   :  { %vm171_vm8 = vcmp.eq.f32.partialorder %v159_v20, %v168_v33  ;;  %267 = vmax.xlane.f32.xlu1 %v266_v35  ;;  %v281_v38 = vmax.f32 %v168_v33, 1e-12 }
 0x174   :  { %vm172_vm9 = vmand %vm514_vm5, %vm171_vm8 }
 0x175   :  { %v269_v36 = vsel %vm172_vm9, %v264_v32, -9999999.0  ;;  %372 = vrsqrt.f32 %v281_v38  ;;  %vm284_vm10 = vcmp.eq.f32.partialorder %v281_v38, inf  ;;  %v287_v45 = vand.u32 2147483648, %v281_v38 }
 0x176   :  { %v270_v37 = vsel %vm161_vm3, %v269_v36, -inf  ;;  %374 = vrsqrt.f32 %v273_v39  ;;  %vm286_vm12 = vcmp.eq.f32.partialorder %v281_v38, 0.0 }
 0x177   :  { %271 = vmax.xlane.f32.xlu1 %v270_v37 }
 0x182   :  { %v373_v40 = vpop.eup %372 }
 0x183   :  { %v375_v41 = vpop.eup %374  ;;  %v283_v42 = vmul.f32 %v373_v40, %v281_v38 }
 0x184   :  { %v275_v43 = vmul.f32 %v375_v41, %v273_v39 }
 0x185   :  { %v285_v44 = vsel %vm284_vm10, %v281_v38, %v283_v42 }
 0x186   :  { %v277_v47 = vsel %vm276_vm11, %v273_v39, %v275_v43  ;;  %v288_v50 = vsel %vm286_vm12, %v287_v45, %v285_v44 }
 0x187   :  { %v280_v51 = vsel %vm278_vm13, %v279_v49, %v277_v47 }
 0x188   :  { %v305_v53 = vmax.f32 %v280_v51, %v288_v50 }
 0x18a   :  { %v306_v55 = vsub.f32 %v280_v51, %v305_v53  ;;  %v309_v56 = vsub.f32 %v288_v50, %v305_v53 }
 0x18c   :  { %v307_v57 = vmul.f32 1.442695, %v306_v55  ;;  %v310_v58 = vmul.f32 1.442695, %v309_v56 }
 0x1fc   :  { %v268_v46 = vpop.xlane.xlu1 %267 }
 0x1fd   :  { %v289_v48 = vmax.f32 %v268_v46, 1e-12 }
 0x1ff   :  { %376 = vrsqrt.f32 %v289_v48  ;;  %vm292_vm14 = vcmp.eq.f32.partialorder %v289_v48, inf  ;;  %v295_v0 = vand.u32 2147483648, %v289_v48  ;;  %vm294_vm0 = vcmp.eq.f32.partialorder %v289_v48, 0.0 }
 0x200   :  { %v272_v52 = vpop.xlane.xlu1 %271 }
 0x201   :  { %v297_v54 = vmax.f32 %v272_v52, 1e-12 }
 0x203   :  { %378 = vrsqrt.f32 %v297_v54  ;;  %vm300_vm15 = vcmp.eq.f32.partialorder %v297_v54, inf  ;;  %v303_v1 = vand.u32 2147483648, %v297_v54  ;;  %vm302_vm1 = vcmp.eq.f32.partialorder %v297_v54, 0.0 }
 0x204   :  { %380 = vpow2.f32 %v307_v57 }
 0x205   :  { %382 = vpow2.f32 %v310_v58 }
 0x20c   :  { %v377_v59 = vpop.eup %376 }
 0x20d   :  { %v291_v60 = vmul.f32 %v377_v59, %v289_v48 }
 0x20f   :  { %v293_v62 = vsel %vm292_vm14, %v289_v48, %v291_v60 }
 0x210   :  { %v379_v61 = vpop.eup %378  ;;  %v296_v3 = vsel %vm294_vm0, %v295_v0, %v293_v62 }
 0x211   :  { %v299_v63 = vmul.f32 %v379_v61, %v297_v54  ;;  %v381_v10 = vpop.eup %380 }
 0x212   :  { %v383_v11 = vpop.eup %382 }
 0x213   :  { %v301_v2 = vsel %vm300_vm15, %v297_v54, %v299_v63  ;;  %v312_v12 = vadd.f32 %v383_v11, %v381_v10 }
 0x214   :  { %v304_v4 = vsel %vm302_vm1, %v303_v1, %v301_v2 }
 0x215   :  { %v318_v5 = vmax.f32 %v296_v3, %v304_v4 }
 0x217   :  { %v319_v6 = vsub.f32 %v296_v3, %v318_v5  ;;  %v322_v7 = vsub.f32 %v304_v4, %v318_v5 }
 0x219   :  { %v320_v8 = vmul.f32 1.442695, %v319_v6  ;;  %v323_v9 = vmul.f32 1.442695, %v322_v7 }
 0x21b   :  { %384 = vpow2.f32 %v320_v8 }
 0x21c   :  { %386 = vpow2.f32 %v323_v9 }
 0x21d   :  { %388 = vlog2.f32 %v312_v12 }
 0x228   :  { %v385_v13 = vpop.eup %384 }
 0x229   :  { %v387_v14 = vpop.eup %386 }
 0x22a   :  { %v325_v15 = vadd.f32 %v387_v14, %v385_v13  ;;  %v389_v16 = vpop.eup %388 }
 0x22b   :  { %v314_v17 = vmul.f32 0.6931472, %v389_v16 }
 0x22c   :  { %390 = vrcp.f32 %v325_v15 }
 0x22d   :  { %v315_v18 = vadd.f32 %v314_v17, %v305_v53 }
 0x22f   :  { %v316_v20 = vsub.f32 %v280_v51, %v315_v18  ;;  %v317_v21 = vsub.f32 %v288_v50, %v315_v18 }
 0x239   :  { %v391_v19 = vpop.eup %390 }
 0x23a   :  { %v328_v22 = vmul.f32 %v391_v19, %v385_v13  ;;  %v329_v23 = vmul.f32 %v391_v19, %v387_v14 }
 0x23c   :  { %v330_v24 = vmul.f32 %v328_v22, %v316_v20  ;;  %v331_v25 = vmul.f32 %v329_v23, %v317_v21 }
 0x23e   :  { %v332_v26 = vadd.f32 %v331_v25, %v330_v24 }
 0x240   :  { %v333_v28 = vsub.f32 0.0, %v332_v26 }
 0x242   :  { %v335_v29 = vmul.f32 %v334_v27, %v333_v28 }
 0x244   :  { %337 = vst.msk [vmem:[%s546_s9] sm:$0xff] %vm336_vm2, %v335_v29 }
 0x245   :  { %342 = vsyncpa [#allocation3], 1 }
 0x246   :  { %343 = vsyncpa [#allocation5], 1 }

</bundles_post_ra>
